<compile_context>
chip_gen: v6e
topology: v6e:2x2x1
jax: 0.10.0
libtpu: 0.0.40
codegen_flags: <defaults>
</compile_context>

<pallas_src>
import jax
import jax.numpy as jnp
from jax import lax
from jax.experimental import pallas as pl
from jax.experimental.pallas import tpu as pltpu

MARGIN = 0.0
EPS = 1e-6

_LANE = 128
_VMEM_LIMIT = 32 * 1024 * 1024    # safe scoped-VMEM request on v5e/v6e/v7x
_TILE_BUDGET = 16 * 1024 * 1024   # 3 streams x 2 pipeline buffers x (TN x D)


def _round_up(x, m):
    return (x + m - 1) // m * m


def _pick_tile(n_rows, d, itemsize, max_tile):
    """Choose (row_tile, padded_rows).

    row_tile is the largest power of two in [128, max_tile] whose
    double-buffered, 3-stream embedding working set fits _TILE_BUDGET
    (keeps double-buffering alive even on v7x's smaller VMEM).  If the
    whole problem fits in one tile, a single full block is used.
    """
    max_tile = max(_LANE, int(max_tile))
    tn = _LANE
    while (tn * 2 <= max_tile
           and 3 * 2 * (tn * 2) * d * itemsize <= _TILE_BUDGET):
        tn *= 2
    n_pad8 = _round_up(n_rows, 8)
    if n_pad8 <= tn:
        return n_pad8, n_pad8          # single block == full (padded) array
    return tn, _round_up(n_rows, tn)   # lane-aligned tile, exact grid


def _epilogue(pos_diff, neg_diff, agt, ngt, pgt, out_ref):
    """Distances + coeff + relu + mean; writes the scalar loss to SMEM."""
    B = pos_diff.shape[0]
    pos_dist = jnp.sqrt(jnp.sum(pos_diff * pos_diff, axis=1, keepdims=True))
    neg_dist = jnp.sqrt(jnp.sum(neg_diff * neg_diff, axis=1, keepdims=True))
    coeff = jnp.abs(ngt - agt) * pl.reciprocal(jnp.abs(pgt - agt) + EPS,
                                               approx=False)
    loss = jnp.maximum(pos_dist - coeff * neg_dist + MARGIN, 0.0)
    out_ref[0, 0] = jnp.sum(loss) * (1.0 / B)


def _triplet_kernel(ab_ref, pb_ref, nb_ref,          # batch rows (1, TN) int32
                    anc_ref, pos_ref, neg_ref,       # node slabs (TN, D)
                    agt_ref, ngt_ref, pgt_ref,       # ground truth (B, 1) f32
                    out_ref,                         # (1, 1) f32, SMEM
                    acc_a, acc_p, acc_n):            # (B, D) f32 scratch
    k = pl.program_id(0)
    B = acc_a.shape[0]
    TN = anc_ref.shape[0]

    @pl.when(k == 0)
    def _init():
        acc_a[...] = jnp.zeros_like(acc_a)
        acc_p[...] = jnp.zeros_like(acc_p)
        acc_n[...] = jnp.zeros_like(acc_n)

    # One shared iota per tile (JAX does not CSE broadcast_in_dim).
    graph_ids = lax.broadcasted_iota(jnp.int32, (B, TN), 0)
    dt = anc_ref.dtype

    # global_add_pool as one-hot (B,TN) @ (TN,D) on the MXU, f32 accumulate.
    acc_a[...] += jnp.dot((ab_ref[...] == graph_ids).astype(dt), anc_ref[...],
                          preferred_element_type=jnp.float32)
    acc_p[...] += jnp.dot((pb_ref[...] == graph_ids).astype(dt), pos_ref[...],
                          preferred_element_type=jnp.float32)
    acc_n[...] += jnp.dot((nb_ref[...] == graph_ids).astype(dt), neg_ref[...],
                          preferred_element_type=jnp.float32)

    @pl.when(k == pl.num_programs(0) - 1)
    def _finish():
        _epilogue(acc_p[...] - acc_a[...], acc_n[...] - acc_a[...],
                  agt_ref[...], ngt_ref[...], pgt_ref[...], out_ref)


def _triplet_kernel_shared(b_ref,                    # shared batch row (1, TN)
                           anc_ref, pos_ref, neg_ref,
                           agt_ref, ngt_ref, pgt_ref,
                           out_ref,
                           acc_pd, acc_nd):          # pooled (pos-anc),(neg-anc)
    """Fast path: identical batch vectors -> one one-hot, pooled differences."""
    k = pl.program_id(0)
    B = acc_pd.shape[0]
    TN = anc_ref.shape[0]

    @pl.when(k == 0)
    def _init():
        acc_pd[...] = jnp.zeros_like(acc_pd)
        acc_nd[...] = jnp.zeros_like(acc_nd)

    graph_ids = lax.broadcasted_iota(jnp.int32, (B, TN), 0)
    onehot = (b_ref[...] == graph_ids).astype(anc_ref.dtype)
    anc = anc_ref[...]
    acc_pd[...] += jnp.dot(onehot, pos_ref[...] - anc,
                           preferred_element_type=jnp.float32)
    acc_nd[...] += jnp.dot(onehot, neg_ref[...] - anc,
                           preferred_element_type=jnp.float32)

    @pl.when(k == pl.num_programs(0) - 1)
    def _finish():
        _epilogue(acc_pd[...], acc_nd[...],
                  agt_ref[...], ngt_ref[...], pgt_ref[...], out_ref)


def _pad_stream(batch, nodes, n_pad, num_graphs, node_dtype):
    n = nodes.shape[0]
    b = batch.astype(jnp.int32).reshape(1, n)
    # padded rows get batch id == num_graphs -> never matched by the one-hot
    b = jnp.pad(b, ((0, 0), (0, n_pad - n)), constant_values=num_graphs)
    x = jnp.pad(nodes.astype(node_dtype), ((0, n_pad - n), (0, 0)))
    return b, x


def triplet_loss_regression(anchor_batch, negative_batch, positive_batch,
                            anchor, negative, positive,
                            anchor_gt, negative_gt, positive_gt,
                            num_graphs, *,
                            node_dtype=jnp.float32,
                            max_rows_per_tile=1024,
                            same_batch=None):
    D = anchor.shape[1]
    assert positive.shape[1] == D and negative.shape[1] == D
    B = int(num_graphs)

    if same_batch is None:
        same_batch = (anchor_batch is positive_batch is negative_batch
                      and anchor.shape == positive.shape == negative.shape)

    itemsize = jnp.dtype(node_dtype).itemsize
    n_max = max(anchor.shape[0], positive.shape[0], negative.shape[0])
    tn, n_pad = _pick_tile(n_max, D, itemsize, max_rows_per_tile)
    grid = (n_pad // tn,)

    agt = anchor_gt.astype(jnp.float32).reshape(B, 1)
    ngt = negative_gt.astype(jnp.float32).reshape(B, 1)
    pgt = positive_gt.astype(jnp.float32).reshape(B, 1)

    ab, anc = _pad_stream(anchor_batch, anchor, n_pad, B, node_dtype)
    pb, pos = _pad_stream(positive_batch, positive, n_pad, B, node_dtype)
    nb, neg = _pad_stream(negative_batch, negative, n_pad, B, node_dtype)

    idx_spec = pl.BlockSpec((1, tn), lambda k: (0, k))
    emb_spec = pl.BlockSpec((tn, D), lambda k: (k, 0))
    gt_spec = pl.BlockSpec((B, 1), lambda k: (0, 0))
    out_spec = pl.BlockSpec(memory_space=pltpu.MemorySpace.SMEM)

    if same_batch:
        kernel = _triplet_kernel_shared
        args = (ab, anc, pos, neg, agt, ngt, pgt)
        in_specs = [idx_spec, emb_spec, emb_spec, emb_spec,
                    gt_spec, gt_spec, gt_spec]
        scratch = [pltpu.VMEM((B, D), jnp.float32)] * 2
    else:
        kernel = _triplet_kernel
        args = (ab, pb, nb, anc, pos, neg, agt, ngt, pgt)
        in_specs = [idx_spec, idx_spec, idx_spec,
                    emb_spec, emb_spec, emb_spec,
                    gt_spec, gt_spec, gt_spec]
        scratch = [pltpu.VMEM((B, D), jnp.float32)] * 3

    out = pl.pallas_call(
        kernel,
        out_shape=jax.ShapeDtypeStruct((1, 1), jnp.float32),
        grid_spec=pltpu.PrefetchScalarGridSpec(
            num_scalar_prefetch=0,
            grid=grid,
            in_specs=in_specs,
            out_specs=out_spec,
            scratch_shapes=scratch),
        compiler_params=pltpu.CompilerParams(
            dimension_semantics=("arbitrary",),   # reduction over node tiles
            vmem_limit_bytes=_VMEM_LIMIT),
    )(*args)
    return out[0, 0]


def _reference(anchor_batch, negative_batch, positive_batch,
               anchor, negative, positive,
               anchor_gt, negative_gt, positive_gt, num_graphs):
    pool = lambda x, b: jax.ops.segment_sum(x, b, num_segments=num_graphs)
    a = pool(anchor, anchor_batch)
    p = pool(positive, positive_batch)
    n = pool(negative, negative_batch)
    pos_d = jnp.linalg.norm(p - a, axis=1)
    neg_d = jnp.linalg.norm(n - a, axis=1)
    coeff = jnp.abs(negative_gt - anchor_gt) / (jnp.abs(positive_gt - anchor_gt) + EPS)
    return jnp.mean(jnp.maximum(pos_d - coeff * neg_d + MARGIN, 0.0))


if __name__ == "__main__":
    key = jax.random.PRNGKey(0)
    B = 4     # graphs per batch
    D = 32    # node embedding width
    # different node counts per stream (exercises padding + general path)
    Na, Np, Nn = 300, 280, 320

    ks = jax.random.split(key, 9)
    anchor_batch = jnp.sort(jax.random.randint(ks[0], (Na,), 0, B)).astype(jnp.int32)
    positive_batch = jnp.sort(jax.random.randint(ks[1], (Np,), 0, B)).astype(jnp.int32)
    negative_batch = jnp.sort(jax.random.randint(ks[2], (Nn,), 0, B)).astype(jnp.int32)

    anchor = jax.random.normal(ks[3], (Na, D), dtype=jnp.float32)
    positive = jax.random.normal(ks[4], (Np, D), dtype=jnp.float32)
    negative = jax.random.normal(ks[5], (Nn, D), dtype=jnp.float32)
    anchor_gt = jax.random.normal(ks[6], (B,), dtype=jnp.float32)
    negative_gt = jax.random.normal(ks[7], (B,), dtype=jnp.float32)
    positive_gt = jax.random.normal(ks[8], (B,), dtype=jnp.float32)

    ref = _reference(anchor_batch, negative_batch, positive_batch,
                     anchor, negative, positive,
                     anchor_gt, negative_gt, positive_gt, B)

    # 1) General path, f32 node loads, small tile -> multi-step grid.
    loss_f32 = triplet_loss_regression(
        anchor_batch, negative_batch, positive_batch,
        anchor, negative, positive,
        anchor_gt, negative_gt, positive_gt, num_graphs=B,
        node_dtype=jnp.float32, max_rows_per_tile=128)
    loss_f32 = jax.block_until_ready(loss_f32)
    assert jnp.allclose(loss_f32, ref, rtol=1e-5, atol=1e-5), (loss_f32, ref)

    # 2) bf16 node loads (halves HBM traffic), f32 accumulate, default tiling.
    loss_bf16 = triplet_loss_regression(
        anchor_batch, negative_batch, positive_batch,
        anchor, negative, positive,
        anchor_gt, negative_gt, positive_gt, num_graphs=B,
        node_dtype=jnp.bfloat16)
    loss_bf16 = jax.block_until_ready(loss_bf16)
    assert jnp.allclose(loss_bf16, ref, rtol=3e-2, atol=3e-2), (loss_bf16, ref)

    # 3) Shared-batch fast path (single one-hot, pooled differences).
    pos2 = jax.random.normal(jax.random.PRNGKey(1), (Na, D), dtype=jnp.float32)
    neg2 = jax.random.normal(jax.random.PRNGKey(2), (Na, D), dtype=jnp.float32)
    ref2 = _reference(anchor_batch, anchor_batch, anchor_batch,
                      anchor, neg2, pos2,
                      anchor_gt, negative_gt, positive_gt, B)
    loss_shared = triplet_loss_regression(
        anchor_batch, anchor_batch, anchor_batch,
        anchor, neg2, pos2,
        anchor_gt, negative_gt, positive_gt, num_graphs=B,
        max_rows_per_tile=128)
    loss_shared = jax.block_until_ready(loss_shared)
    assert jnp.allclose(loss_shared, ref2, rtol=1e-5, atol=1e-5), (loss_shared, ref2)

    # TODO(synk): backward pass (sqrt at zero distance would need an eps guard).
    print("KERNEL_OK")
</pallas_src>

<mosaic_0001>
module attributes {stable_mosaic.version = 11 : i64} {
  func.func @_triplet_kernel(%arg0: i32, %arg1: memref<1x128xi32, #tpu.memory_space<vmem>>, %arg2: memref<1x128xi32, #tpu.memory_space<vmem>>, %arg3: memref<1x128xi32, #tpu.memory_space<vmem>>, %arg4: memref<128x32xf32, #tpu.memory_space<vmem>>, %arg5: memref<128x32xf32, #tpu.memory_space<vmem>>, %arg6: memref<128x32xf32, #tpu.memory_space<vmem>>, %arg7: memref<4x1xf32, #tpu.memory_space<vmem>>, %arg8: memref<4x1xf32, #tpu.memory_space<vmem>>, %arg9: memref<4x1xf32, #tpu.memory_space<vmem>>, %arg10: memref<1x1xf32, #tpu.memory_space<smem>>, %arg11: memref<4x32xf32, #tpu.memory_space<vmem>>, %arg12: memref<4x32xf32, #tpu.memory_space<vmem>>, %arg13: memref<4x32xf32, #tpu.memory_space<vmem>>) attributes {dimension_semantics = [#tpu.dimension_semantics<arbitrary>], iteration_bounds = array<i64: 3>, scalar_prefetch = 0 : i64, scratch_operands = 3 : i64, tpu.core_type = #tpu.core_type<tc>, window_params = [{transform_indices = @transform_0, window_bounds = array<i64: 1, 128>}, {transform_indices = @transform_1, window_bounds = array<i64: 1, 128>}, {transform_indices = @transform_2, window_bounds = array<i64: 1, 128>}, {transform_indices = @transform_3, window_bounds = array<i64: 128, 32>}, {transform_indices = @transform_4, window_bounds = array<i64: 128, 32>}, {transform_indices = @transform_5, window_bounds = array<i64: 128, 32>}, {pipeline_mode = #tpu.pipeline_mode<synchronous>, transform_indices = @transform_6, window_bounds = array<i64: 4, 1>}, {pipeline_mode = #tpu.pipeline_mode<synchronous>, transform_indices = @transform_7, window_bounds = array<i64: 4, 1>}, {pipeline_mode = #tpu.pipeline_mode<synchronous>, transform_indices = @transform_8, window_bounds = array<i64: 4, 1>}, {transform_indices = @transform_9, window_bounds = array<i64: 1, 1>}]} {
    %c0_i32 = arith.constant 0 : i32
    %0 = arith.cmpi eq, %arg0, %c0_i32 : i32
    %1 = arith.extui %0 : i1 to i32
    %c0_i32_0 = arith.constant 0 : i32
    %2 = arith.cmpi ne, %1, %c0_i32_0 : i32
    scf.if %2 {
      %cst_27 = arith.constant 0.000000e+00 : f32
      %37 = vector.broadcast %cst_27 : f32 to vector<4x32xf32>
      %c0_28 = arith.constant 0 : index
      %c0_29 = arith.constant 0 : index
      %38 = vector.load %arg11[%c0_28, %c0_29] : memref<4x32xf32, #tpu.memory_space<vmem>>, vector<4x32xf32>
      tpu.vector_store %arg11[%c0_28, %c0_29], %37 {strides = array<i32>} : memref<4x32xf32, #tpu.memory_space<vmem>>, vector<4x32xf32>,
      %cst_30 = arith.constant 0.000000e+00 : f32
      %39 = vector.broadcast %cst_30 : f32 to vector<4x32xf32>
      %c0_31 = arith.constant 0 : index
      %c0_32 = arith.constant 0 : index
      %40 = vector.load %arg12[%c0_31, %c0_32] : memref<4x32xf32, #tpu.memory_space<vmem>>, vector<4x32xf32>
      tpu.vector_store %arg12[%c0_31, %c0_32], %39 {strides = array<i32>} : memref<4x32xf32, #tpu.memory_space<vmem>>, vector<4x32xf32>,
      %cst_33 = arith.constant 0.000000e+00 : f32
      %41 = vector.broadcast %cst_33 : f32 to vector<4x32xf32>
      %c0_34 = arith.constant 0 : index
      %c0_35 = arith.constant 0 : index
      %42 = vector.load %arg13[%c0_34, %c0_35] : memref<4x32xf32, #tpu.memory_space<vmem>>, vector<4x32xf32>
      tpu.vector_store %arg13[%c0_34, %c0_35], %41 {strides = array<i32>} : memref<4x32xf32, #tpu.memory_space<vmem>>, vector<4x32xf32>,
    } else {
    }
    %3 = tpu.iota {dimensions = array<i32: 0>} : vector<4x128xi32>
    %c0 = arith.constant 0 : index
    %c0_1 = arith.constant 0 : index
    %4 = vector.load %arg11[%c0, %c0_1] : memref<4x32xf32, #tpu.memory_space<vmem>>, vector<4x32xf32>
    %c0_2 = arith.constant 0 : index
    %c0_3 = arith.constant 0 : index
    %5 = vector.load %arg1[%c0_2, %c0_3] : memref<1x128xi32, #tpu.memory_space<vmem>>, vector<1x128xi32>
    %6 = vector.broadcast %5 : vector<1x128xi32> to vector<4x128xi32>
    %7 = arith.cmpi eq, %6, %3 : vector<4x128xi32>
    %8 = arith.extui %7 : vector<4x128xi1> to vector<4x128xi32>
    %9 = arith.sitofp %8 : vector<4x128xi32> to vector<4x128xf32>
    %c0_4 = arith.constant 0 : index
    %c0_5 = arith.constant 0 : index
    %10 = vector.load %arg4[%c0_4, %c0_5] : memref<128x32xf32, #tpu.memory_space<vmem>>, vector<128x32xf32>
    %cst = arith.constant dense<0.000000e+00> : vector<4x32xf32>
    %11 = tpu.matmul %9, %10, %cst {dimension_numbers = #tpu.dot_dimension_numbers<[1], [0], [0], [1], [0, 0, 1, 1], [], []>} : vector<4x128xf32>, vector<128x32xf32>, vector<4x32xf32> -> vector<4x32xf32>
    %12 = arith.addf %4, %11 : vector<4x32xf32>
    %c0_6 = arith.constant 0 : index
    %c0_7 = arith.constant 0 : index
    %13 = vector.load %arg11[%c0_6, %c0_7] : memref<4x32xf32, #tpu.memory_space<vmem>>, vector<4x32xf32>
    tpu.vector_store %arg11[%c0_6, %c0_7], %12 {strides = array<i32>} : memref<4x32xf32, #tpu.memory_space<vmem>>, vector<4x32xf32>,
    %c0_8 = arith.constant 0 : index
    %c0_9 = arith.constant 0 : index
    %14 = vector.load %arg12[%c0_8, %c0_9] : memref<4x32xf32, #tpu.memory_space<vmem>>, vector<4x32xf32>
    %c0_10 = arith.constant 0 : index
    %c0_11 = arith.constant 0 : index
    %15 = vector.load %arg2[%c0_10, %c0_11] : memref<1x128xi32, #tpu.memory_space<vmem>>, vector<1x128xi32>
    %16 = vector.broadcast %15 : vector<1x128xi32> to vector<4x128xi32>
    %17 = arith.cmpi eq, %16, %3 : vector<4x128xi32>
    %18 = arith.extui %17 : vector<4x128xi1> to vector<4x128xi32>
    %19 = arith.sitofp %18 : vector<4x128xi32> to vector<4x128xf32>
    %c0_12 = arith.constant 0 : index
    %c0_13 = arith.constant 0 : index
    %20 = vector.load %arg5[%c0_12, %c0_13] : memref<128x32xf32, #tpu.memory_space<vmem>>, vector<128x32xf32>
    %cst_14 = arith.constant dense<0.000000e+00> : vector<4x32xf32>
    %21 = tpu.matmul %19, %20, %cst_14 {dimension_numbers = #tpu.dot_dimension_numbers<[1], [0], [0], [1], [0, 0, 1, 1], [], []>} : vector<4x128xf32>, vector<128x32xf32>, vector<4x32xf32> -> vector<4x32xf32>
    %22 = arith.addf %14, %21 : vector<4x32xf32>
    %c0_15 = arith.constant 0 : index
    %c0_16 = arith.constant 0 : index
    %23 = vector.load %arg12[%c0_15, %c0_16] : memref<4x32xf32, #tpu.memory_space<vmem>>, vector<4x32xf32>
    tpu.vector_store %arg12[%c0_15, %c0_16], %22 {strides = array<i32>} : memref<4x32xf32, #tpu.memory_space<vmem>>, vector<4x32xf32>,
    %c0_17 = arith.constant 0 : index
    %c0_18 = arith.constant 0 : index
    %24 = vector.load %arg13[%c0_17, %c0_18] : memref<4x32xf32, #tpu.memory_space<vmem>>, vector<4x32xf32>
    %c0_19 = arith.constant 0 : index
    %c0_20 = arith.constant 0 : index
    %25 = vector.load %arg3[%c0_19, %c0_20] : memref<1x128xi32, #tpu.memory_space<vmem>>, vector<1x128xi32>
    %26 = vector.broadcast %25 : vector<1x128xi32> to vector<4x128xi32>
    %27 = arith.cmpi eq, %26, %3 : vector<4x128xi32>
    %28 = arith.extui %27 : vector<4x128xi1> to vector<4x128xi32>
    %29 = arith.sitofp %28 : vector<4x128xi32> to vector<4x128xf32>
    %c0_21 = arith.constant 0 : index
    %c0_22 = arith.constant 0 : index
    %30 = vector.load %arg6[%c0_21, %c0_22] : memref<128x32xf32, #tpu.memory_space<vmem>>, vector<128x32xf32>
    %cst_23 = arith.constant dense<0.000000e+00> : vector<4x32xf32>
    %31 = tpu.matmul %29, %30, %cst_23 {dimension_numbers = #tpu.dot_dimension_numbers<[1], [0], [0], [1], [0, 0, 1, 1], [], []>} : vector<4x128xf32>, vector<128x32xf32>, vector<4x32xf32> -> vector<4x32xf32>
    %32 = arith.addf %24, %31 : vector<4x32xf32>
    %c0_24 = arith.constant 0 : index
    %c0_25 = arith.constant 0 : index
    %33 = vector.load %arg13[%c0_24, %c0_25] : memref<4x32xf32, #tpu.memory_space<vmem>>, vector<4x32xf32>
    tpu.vector_store %arg13[%c0_24, %c0_25], %32 {strides = array<i32>} : memref<4x32xf32, #tpu.memory_space<vmem>>, vector<4x32xf32>,
    %c2_i32 = arith.constant 2 : i32
    %34 = arith.cmpi eq, %arg0, %c2_i32 : i32
    %35 = arith.extui %34 : i1 to i32
    %c0_i32_26 = arith.constant 0 : i32
    %36 = arith.cmpi ne, %35, %c0_i32_26 : i32
    scf.if %36 {
      %c0_27 = arith.constant 0 : index
      %c0_28 = arith.constant 0 : index
      %37 = vector.load %arg12[%c0_27, %c0_28] : memref<4x32xf32, #tpu.memory_space<vmem>>, vector<4x32xf32>
      %c0_29 = arith.constant 0 : index
      %c0_30 = arith.constant 0 : index
      %38 = vector.load %arg11[%c0_29, %c0_30] : memref<4x32xf32, #tpu.memory_space<vmem>>, vector<4x32xf32>
      %39 = arith.subf %37, %38 : vector<4x32xf32>
      %c0_31 = arith.constant 0 : index
      %c0_32 = arith.constant 0 : index
      %40 = vector.load %arg13[%c0_31, %c0_32] : memref<4x32xf32, #tpu.memory_space<vmem>>, vector<4x32xf32>
      %c0_33 = arith.constant 0 : index
      %c0_34 = arith.constant 0 : index
      %41 = vector.load %arg11[%c0_33, %c0_34] : memref<4x32xf32, #tpu.memory_space<vmem>>, vector<4x32xf32>
      %42 = arith.subf %40, %41 : vector<4x32xf32>
      %c0_35 = arith.constant 0 : index
      %c0_36 = arith.constant 0 : index
      %43 = vector.load %arg7[%c0_35, %c0_36] : memref<4x1xf32, #tpu.memory_space<vmem>>, vector<4x1xf32>
      %c0_37 = arith.constant 0 : index
      %c0_38 = arith.constant 0 : index
      %44 = vector.load %arg8[%c0_37, %c0_38] : memref<4x1xf32, #tpu.memory_space<vmem>>, vector<4x1xf32>
      %c0_39 = arith.constant 0 : index
      %c0_40 = arith.constant 0 : index
      %45 = vector.load %arg9[%c0_39, %c0_40] : memref<4x1xf32, #tpu.memory_space<vmem>>, vector<4x1xf32>
      %46 = arith.mulf %39, %39 : vector<4x32xf32>
      %cst_41 = arith.constant dense<0.000000e+00> : vector<4xf32>
      %47 = vector.multi_reduction <add>, %46, %cst_41 [1] : vector<4x32xf32> to vector<4xf32>
      %48 = vector.shape_cast %47 : vector<4xf32> to vector<4x1xf32>
      %49 = math.sqrt %48 : vector<4x1xf32>
      %50 = arith.mulf %42, %42 : vector<4x32xf32>
      %cst_42 = arith.constant dense<0.000000e+00> : vector<4xf32>
      %51 = vector.multi_reduction <add>, %50, %cst_42 [1] : vector<4x32xf32> to vector<4xf32>
      %52 = vector.shape_cast %51 : vector<4xf32> to vector<4x1xf32>
      %53 = math.sqrt %52 : vector<4x1xf32>
      %54 = arith.subf %44, %43 : vector<4x1xf32>
      %55 = math.absf %54 : vector<4x1xf32>
      %56 = arith.subf %45, %43 : vector<4x1xf32>
      %57 = math.absf %56 : vector<4x1xf32>
      %cst_43 = arith.constant 9.99999997E-7 : f32
      %58 = vector.broadcast %cst_43 : f32 to vector<4x1xf32>
      %59 = arith.addf %57, %58 : vector<4x1xf32>
      %60 = tpu.reciprocal %59 : vector<4x1xf32> -> vector<4x1xf32>
      %61 = arith.mulf %55, %60 : vector<4x1xf32>
      %62 = arith.mulf %61, %53 : vector<4x1xf32>
      %63 = arith.subf %49, %62 : vector<4x1xf32>
      %cst_44 = arith.constant 0.000000e+00 : f32
      %64 = vector.broadcast %cst_44 : f32 to vector<4x1xf32>
      %65 = arith.addf %63, %64 : vector<4x1xf32>
      %cst_45 = arith.constant 0.000000e+00 : f32
      %66 = vector.broadcast %cst_45 : f32 to vector<4x1xf32>
      %67 = arith.maximumf %65, %66 : vector<4x1xf32>
      %68 = vector.shape_cast %67 : vector<4x1xf32> to vector<1x4x1xf32>
      %cst_46 = arith.constant dense<0.000000e+00> : vector<1xf32>
      %69 = vector.multi_reduction <add>, %68, %cst_46 [1, 2] : vector<1x4x1xf32> to vector<1xf32>
      %70 = vector.shape_cast %69 : vector<1xf32> to vector<1x1x1xf32>
      %71 = vector.extract %70[0, 0, 0] : f32 from vector<1x1x1xf32>
      %cst_47 = arith.constant 2.500000e-01 : f32
      %72 = arith.mulf %71, %cst_47 : f32
      %c0_48 = arith.constant 0 : index
      %c0_49 = arith.constant 0 : index
      %73 = memref.load %arg10[%c0_48, %c0_49] : memref<1x1xf32, #tpu.memory_space<smem>>
      memref.store %72, %arg10[%c0_48, %c0_49] : memref<1x1xf32, #tpu.memory_space<smem>>
    } else {
    }
    return
  }
  func.func @transform_0(%arg0: i32) -> (i32, i32) {
    %c0_i32 = arith.constant 0 : i32
    %c0_i32_0 = arith.constant 0 : i32
    return %c0_i32, %arg0 : i32, i32
  }
  func.func @transform_1(%arg0: i32) -> (i32, i32) {
    %c0_i32 = arith.constant 0 : i32
    %c0_i32_0 = arith.constant 0 : i32
    return %c0_i32, %arg0 : i32, i32
  }
  func.func @transform_2(%arg0: i32) -> (i32, i32) {
    %c0_i32 = arith.constant 0 : i32
    %c0_i32_0 = arith.constant 0 : i32
    return %c0_i32, %arg0 : i32, i32
  }
  func.func @transform_3(%arg0: i32) -> (i32, i32) {
    %c0_i32 = arith.constant 0 : i32
    %c0_i32_0 = arith.constant 0 : i32
    return %arg0, %c0_i32 : i32, i32
  }
  func.func @transform_4(%arg0: i32) -> (i32, i32) {
    %c0_i32 = arith.constant 0 : i32
    %c0_i32_0 = arith.constant 0 : i32
    return %arg0, %c0_i32 : i32, i32
  }
  func.func @transform_5(%arg0: i32) -> (i32, i32) {
    %c0_i32 = arith.constant 0 : i32
    %c0_i32_0 = arith.constant 0 : i32
    return %arg0, %c0_i32 : i32, i32
  }
  func.func @transform_6(%arg0: i32) -> (i32, i32) {
    %c0_i32 = arith.constant 0 : i32
    %c0_i32_0 = arith.constant 0 : i32
    %c0_i32_1 = arith.constant 0 : i32
    return %c0_i32, %c0_i32_0 : i32, i32
  }
  func.func @transform_7(%arg0: i32) -> (i32, i32) {
    %c0_i32 = arith.constant 0 : i32
    %c0_i32_0 = arith.constant 0 : i32
    %c0_i32_1 = arith.constant 0 : i32
    return %c0_i32, %c0_i32_0 : i32, i32
  }
  func.func @transform_8(%arg0: i32) -> (i32, i32) {
    %c0_i32 = arith.constant 0 : i32
    %c0_i32_0 = arith.constant 0 : i32
    %c0_i32_1 = arith.constant 0 : i32
    return %c0_i32, %c0_i32_0 : i32, i32
  }
  func.func @transform_9(%arg0: i32) -> (i32, i32) {
    %c0_i32 = arith.constant 0 : i32
    %c0_i32_0 = arith.constant 0 : i32
    %c0_i32_1 = arith.constant 0 : i32
    return %c0_i32, %c0_i32_0 : i32, i32
  }
}

</mosaic_0001>

<bundles_post_ra>
// kernel: tpu_custom_call.1
= control target key start
LH: loop header
LB: loop body
LE: loop exit
PB: predicated region body
PF: predicated region fallthrough
CT: control target
= control target key end

     0   :  { %14 = vsyncpa [#allocation6], 0  ;;  %s1149_s30 = smov 0   ;;  %s1336_s0 = inlined_call_operand.vmem [shape: s32[1,384], index: 0, kind: input, shape index: {}]   ;;  %s1337_s1 = inlined_call_operand.vmem [shape: s32[1,384], index: 1, kind: input, shape index: {}]   ;;  %s1338_s2 = inlined_call_operand.vmem [shape: s32[1,384], index: 2, kind: input, shape index: {}]   ;;  %s1339_s3 = inlined_call_operand.vmem [shape: f32[384,32], index: 3, kind: input, shape index: {}]   ;;  %s1340_s4 = inlined_call_operand.vmem [shape: f32[384,32], index: 4, kind: input, shape index: {}]   ;;  %s1341_s5 = inlined_call_operand.vmem [shape: f32[384,32], index: 5, kind: input, shape index: {}]   ;;  %s1342_s6 = inlined_call_operand.vmem [shape: f32[4,1], index: 6, kind: input, shape index: {}]   ;;  %s1343_s7 = inlined_call_operand.vmem [shape: f32[4,1], index: 7, kind: input, shape index: {}]   ;;  %s1344_s8 = inlined_call_operand.vmem [shape: f32[4,1], index: 8, kind: input, shape index: {}]   ;;  %s1345_s9 = inlined_call_operand.hbm [shape: f32[1,1], index: 9, kind: output, shape index: {}]  }
   0x1 LB: > { %s1155_s10 = sadd.s32 4294967295, %s1092_s30   ;;  %p867_p0 = scmp.ge.s32.totalorder %s1092_s30, 1  ;;  %s1092_s30 = sphi %s1149_s30, %s20_s30  }
   0x2   : > { %p330_p1 = scmp.lt.s32.totalorder %s1092_s30, 4 }
   0x4   : > { %p331_p2 = pnand %p867_p0, %p330_p1 }
   0x5   : > { %p380_p3 = scmp.lt.s32.totalorder (!%p331_p2), %s1155_s10, 2  ;;  %s868_s11 = sshll.u32 (!%p331_p2), %s1155_s10, 4 }
   0x6   : > { %334 = sbr.rel (%p331_p2) target bundleno = 667 (0x29b), region = 56  ;;  %p390_p4 = scmp.lt.s32.totalorder (!%p331_p2), %s868_s11, 47 }
   0x7   : > { %p874_p5 = scmp.ne.s32.totalorder (!%p331_p2), %s1155_s10, 0 }
   0xb   : > { %s1162_s12 = scalar_select %p380_p3, %s1155_s10, 2 }
   0xc   : > { %s1347_s11 = smov (!%p390_p4, %s868_s11), 47  ;;  %410 = sbr.rel (%p874_p5) target bundleno = 20 (0x14), region = 60 }
   0xd   : > { %s382_s15 = scalar_lea.vmem %s1336_s0, %s1162_s12  ;;  %s385_s18 = scalar_lea.vmem %s1337_s1, %s1162_s12 }
   0xe   : > { %s388_s21 = scalar_lea.vmem %s1338_s2, %s1162_s12  ;;  %s869_s22 = sshll.u32 %s1347_s11, 3 }
   0xf   : > { %s1179_s25 = scalar_lea.vmem %s1339_s3, %s869_s22  ;;  %s1184_s28 = scalar_lea.vmem %s1340_s4, %s869_s22 }
  0x10   : > { %s1189_s14 = scalar_lea.vmem %s1341_s5, %s869_s22 }
  0x11   : > { %vm411_vm0 = vcmask 257024   ;;  %v1094_v0 = vmov 0.0  }
  0x12   : > { %412 = vst.msk [vmem:[#allocation2] sm:$0xf] %vm411_vm0, %v1094_v0  ;;  %413 = vst.msk [vmem:[#allocation3] sm:$0xf] %vm411_vm0, %v1094_v0 }
  0x13   : > { %414 = vst.msk [vmem:[#allocation4] sm:$0xf] %vm411_vm0, %v1094_v0 }
  0x14 PF: > { %v441_v1 = vld [vmem:[%s1179_s25 + $0x78] sm:$0xff]  ;;  %v1095_v2 = vmov 0.0   ;;  %v440_v3 = vld [vmem:[%s1179_s25 + $0x70] sm:$0xff]  ;;  %vm1096_vm1 = vmmov 0   ;;  %v439_v4 = vld [vmem:[%s1179_s25 + $0x68] sm:$0xff]  ;;  %v415_v24 = vlaneseq  ;;  %v1097_v38 = vmov 1.0  }
  0x15   : > { %940 = vmatprep.subr.mxu0 %v1095_v2  ;;  %975 = vmatprep.subr.mxu1 %v1095_v2  ;;  %v438_v5 = vld [vmem:[%s1179_s25 + $0x60] sm:$0xff]  ;;  %v539_v6 = vld [vmem:[%s1184_s28 + $0x78] sm:$0xff]  ;;  %v538_v7 = vld [vmem:[%s1184_s28 + $0x70] sm:$0xff]  ;;  %vm513_vm5 = vcmask 257024   ;;  %p884_p6 = scmp.ne.s32.totalorder %s1155_s10, 2 }
  0x16   : > { %941 = vmatpush3.msra.mxu0 %v441_v1  ;;  %972 = vmatprep.mubr.msk.f32.mxu0 %vm1096_vm1, %v1095_v2  ;;  %v437_v8 = vld [vmem:[%s1179_s25 + $0x58] sm:$0xff]  ;;  %v537_v9 = vld [vmem:[%s1184_s28 + $0x68] sm:$0xff]  ;;  %v436_v10 = vld [vmem:[%s1179_s25 + $0x50] sm:$0xff]  ;;  %v1246_v29 = vshrl.u32 %v415_v24, 7 }
  0x17   : > { %942 = vmatprep.subr.mxu0 %v1095_v2  ;;  %1007 = vmatprep.mubr.msk.f32.mxu1 %vm1096_vm1, %v1095_v2  ;;  %v536_v11 = vld [vmem:[%s1184_s28 + $0x60] sm:$0xff]  ;;  %v435_v12 = vld [vmem:[%s1179_s25 + $0x48] sm:$0xff]  ;;  %v535_v13 = vld [vmem:[%s1184_s28 + $0x58] sm:$0xff] }
  0x18   : > { %943 = vmatpush3.msra.mxu0 %v440_v3  ;;  %976 = vmatpush3.msra.mxu1 %v539_v6  ;;  %v434_v14 = vld [vmem:[%s1179_s25 + $0x40] sm:$0xff]  ;;  %v534_v15 = vld [vmem:[%s1184_s28 + $0x50] sm:$0xff]  ;;  %v433_v16 = vld [vmem:[%s1179_s25 + $0x38] sm:$0xff] }
  0x19   : > { %944 = vmatprep.subr.mxu0 %v1095_v2  ;;  %977 = vmatprep.subr.mxu1 %v1095_v2  ;;  %v533_v17 = vld [vmem:[%s1184_s28 + $0x48] sm:$0xff]  ;;  %v432_v18 = vld [vmem:[%s1179_s25 + $0x30] sm:$0xff]  ;;  %v532_v19 = vld [vmem:[%s1184_s28 + $0x40] sm:$0xff] }
  0x1a   : > { %945 = vmatpush3.msra.mxu0 %v439_v4  ;;  %978 = vmatpush3.msra.mxu1 %v538_v7  ;;  %v431_v20 = vld [vmem:[%s1179_s25 + $0x28] sm:$0xff]  ;;  %v531_v21 = vld [vmem:[%s1184_s28 + $0x38] sm:$0xff]  ;;  %v430_v22 = vld [vmem:[%s1179_s25 + $0x20] sm:$0xff] }
  0x1b   : > { %946 = vmatprep.subr.mxu0 %v1095_v2  ;;  %979 = vmatprep.subr.mxu1 %v1095_v2  ;;  %v530_v23 = vld [vmem:[%s1184_s28 + $0x30] sm:$0xff]  ;;  %v429_v25 = vld [vmem:[%s1179_s25 + $0x18] sm:$0xff]  ;;  %v529_v26 = vld [vmem:[%s1184_s28 + $0x28] sm:$0xff] }
  0x1c   : > { %947 = vmatpush3.msra.mxu0 %v438_v5  ;;  %980 = vmatpush3.msra.mxu1 %v537_v9  ;;  %v428_v27 = vld [vmem:[%s1179_s25 + $0x10] sm:$0xff]  ;;  %v528_v28 = vld [vmem:[%s1184_s28 + $0x20] sm:$0xff]  ;;  %v427_v30 = vld [vmem:[%s1179_s25 + $0x8] sm:$0xff] }
  0x1d   : > { %948 = vmatprep.subr.mxu0 %v1095_v2  ;;  %981 = vmatprep.subr.mxu1 %v1095_v2  ;;  %v875_v31 = vld [vmem:[%s382_s15] ss:$0 sm:$0xff]  ;;  %v527_v32 = vld [vmem:[%s1184_s28 + $0x18] sm:$0xff]  ;;  %v526_v34 = vld [vmem:[%s1184_s28 + $0x10] sm:$0xff] }
  0x1e   : > { %949 = vmatpush3.msra.mxu0 %v437_v8  ;;  %982 = vmatpush3.msra.mxu1 %v536_v11  ;;  %v426_v33 = vld [vmem:[%s1179_s25] sm:$0xff]  ;;  %vm423_vm2 = vcmp.eq.s32.totalorder %v875_v31, %v1246_v29  ;;  %v636_v35 = vld [vmem:[%s1189_s14 + $0x78] sm:$0xff]  ;;  %v525_v36 = vld [vmem:[%s1184_s28 + $0x8] sm:$0xff] }
  0x1f   : > { %950 = vmatprep.subr.mxu0 %v1095_v2  ;;  %983 = vmatprep.subr.mxu1 %v1095_v2  ;;  %v878_v37 = vld [vmem:[%s385_s18] ss:$0 sm:$0xff]  ;;  %v635_v39 = vld [vmem:[%s1189_s14 + $0x70] sm:$0xff]  ;;  %v634_v41 = vld [vmem:[%s1189_s14 + $0x68] sm:$0xff] }
  0x20   : > { %951 = vmatpush3.msra.mxu0 %v436_v10  ;;  %984 = vmatpush3.msra.mxu1 %v535_v13  ;;  %v524_v40 = vld [vmem:[%s1184_s28] sm:$0xff]  ;;  %vm521_vm3 = vcmp.eq.s32.totalorder %v878_v37, %v1246_v29  ;;  %v632_v43 = vld [vmem:[%s1189_s14 + $0x58] sm:$0xff]  ;;  %v631_v44 = vld [vmem:[%s1189_s14 + $0x50] sm:$0xff] }
  0x21   : > { %952 = vmatprep.subr.mxu0 %v1095_v2  ;;  %985 = vmatprep.subr.mxu1 %v1095_v2  ;;  %v633_v42 = vld [vmem:[%s1189_s14 + $0x60] sm:$0xff]  ;;  %v630_v45 = vld [vmem:[%s1189_s14 + $0x48] sm:$0xff]  ;;  %v628_v47 = vld [vmem:[%s1189_s14 + $0x38] sm:$0xff] }
  0x22   : > { %953 = vmatpush3.msra.mxu0 %v435_v12  ;;  %986 = vmatpush3.msra.mxu1 %v534_v15  ;;  %v629_v46 = vld [vmem:[%s1189_s14 + $0x40] sm:$0xff]  ;;  %v627_v48 = vld [vmem:[%s1189_s14 + $0x30] sm:$0xff]  ;;  %v626_v49 = vld [vmem:[%s1189_s14 + $0x28] sm:$0xff] }
  0x23   : > { %954 = vmatprep.subr.mxu0 %v1095_v2  ;;  %987 = vmatprep.subr.mxu1 %v1095_v2  ;;  %v625_v50 = vld [vmem:[%s1189_s14 + $0x20] sm:$0xff]  ;;  %v624_v51 = vld [vmem:[%s1189_s14 + $0x18] sm:$0xff]  ;;  %v623_v52 = vld [vmem:[%s1189_s14 + $0x10] sm:$0xff] }
  0x24   : > { %955 = vmatpush3.msra.mxu0 %v434_v14  ;;  %988 = vmatpush3.msra.mxu1 %v533_v17  ;;  %v622_v53 = vld [vmem:[%s1189_s14 + $0x8] sm:$0xff]  ;;  %v881_v54 = vld [vmem:[%s388_s21] ss:$0 sm:$0xff]  ;;  %v515_v60 = vld [vmem:[#allocation3] sm:$0xf] }
  0x25   : > { %956 = vmatprep.subr.mxu0 %v1095_v2  ;;  %989 = vmatprep.subr.mxu1 %v1095_v2  ;;  %v621_v55 = vld [vmem:[%s1189_s14] sm:$0xff]  ;;  %vm618_vm4 = vcmp.eq.s32.totalorder %v881_v54, %v1246_v29  ;;  %v612_v0 = vld [vmem:[#allocation4] sm:$0xf] }
  0x26   : > { %957 = vmatpush3.msra.mxu0 %v433_v16  ;;  %990 = vmatpush3.msra.mxu1 %v532_v19  ;;  %v417_v56 = vld [vmem:[#allocation2] sm:$0xf] }
  0x27   : > { %958 = vmatprep.subr.mxu0 %v1095_v2  ;;  %991 = vmatprep.subr.mxu1 %v1095_v2 }
  0x28   : > { %959 = vmatpush3.msra.mxu0 %v432_v18  ;;  %992 = vmatpush3.msra.mxu1 %v531_v21 }
  0x29   : > { %960 = vmatprep.subr.mxu0 %v1095_v2  ;;  %993 = vmatprep.subr.mxu1 %v1095_v2 }
  0x2a   : > { %961 = vmatpush3.msra.mxu0 %v431_v20  ;;  %994 = vmatpush3.msra.mxu1 %v530_v23 }
  0x2b   : > { %962 = vmatprep.subr.mxu0 %v1095_v2  ;;  %995 = vmatprep.subr.mxu1 %v1095_v2 }
  0x2c   : > { %963 = vmatpush3.msra.mxu0 %v430_v22  ;;  %996 = vmatpush3.msra.mxu1 %v529_v26 }
  0x2d   : > { %964 = vmatprep.subr.mxu0 %v1095_v2  ;;  %997 = vmatprep.subr.mxu1 %v1095_v2 }
  0x2e   : > { %965 = vmatpush3.msra.mxu0 %v429_v25  ;;  %998 = vmatpush3.msra.mxu1 %v528_v28 }
  0x2f   : > { %966 = vmatprep.subr.mxu0 %v1095_v2  ;;  %999 = vmatprep.subr.mxu1 %v1095_v2 }
  0x30   : > { %967 = vmatpush3.msra.mxu0 %v428_v27  ;;  %1000 = vmatpush3.msra.mxu1 %v527_v32 }
  0x31   : > { %968 = vmatprep.subr.mxu0 %v1095_v2  ;;  %1001 = vmatprep.subr.mxu1 %v1095_v2 }
  0x32   : > { %969 = vmatpush3.msra.mxu0 %v427_v30  ;;  %1002 = vmatpush3.msra.mxu1 %v526_v34 }
  0x33   : > { %970 = vmatprep.subr.mxu0 %v1095_v2  ;;  %1003 = vmatprep.subr.mxu1 %v1095_v2 }
  0x34   : > { %971 = vmatpush3.msra.mxu0 %v426_v33  ;;  %1004 = vmatpush3.msra.mxu1 %v525_v36 }
  0x35   : > { %973 = vmatmul.mubr.msk.f32.vlgmr.msra.gmra.mxu0 %vm423_vm2, %v1097_v38  ;;  %1010 = vmatprep.subr.mxu0 %v1095_v2 }
  0x36   : > { %1011 = vmatpush3.msra.mxu0 %v636_v35  ;;  %1005 = vmatprep.subr.mxu1 %v1095_v2 }
  0x37   : > { %1012 = vmatprep.subr.mxu0 %v1095_v2  ;;  %1006 = vmatpush3.msra.mxu1 %v524_v40 }
  0x38   : > { %1013 = vmatpush3.msra.mxu0 %v635_v39  ;;  %1008 = vmatmul.mubr.msk.f32.vlgmr.msra.gmra.mxu1 %vm521_vm3, %v1097_v38 }
  0x39   : > { %1014 = vmatprep.subr.mxu0 %v1095_v2  ;;  %1042 = vmatprep.mubr.msk.f32.mxu0 %vm1096_vm1, %v1095_v2 }
  0x3a   : > { %1015 = vmatpush3.msra.mxu0 %v634_v41 }
  0x3b   : > { %1016 = vmatprep.subr.mxu0 %v1095_v2 }
  0x3c   : > { %1017 = vmatpush3.msra.mxu0 %v633_v42 }
  0x3d   : > { %1018 = vmatprep.subr.mxu0 %v1095_v2 }
  0x3e   : > { %1019 = vmatpush3.msra.mxu0 %v632_v43 }
  0x3f   : > { %1020 = vmatprep.subr.mxu0 %v1095_v2 }
  0x40   : > { %1021 = vmatpush3.msra.mxu0 %v631_v44 }
  0x41   : > { %1022 = vmatprep.subr.mxu0 %v1095_v2 }
  0x42   : > { %1023 = vmatpush3.msra.mxu0 %v630_v45 }
  0x43   : > { %1024 = vmatprep.subr.mxu0 %v1095_v2 }
  0x44   : > { %1025 = vmatpush3.msra.mxu0 %v629_v46 }
  0x45   : > { %1026 = vmatprep.subr.mxu0 %v1095_v2 }
  0x46   : > { %1027 = vmatpush3.msra.mxu0 %v628_v47 }
  0x47   : > { %1028 = vmatprep.subr.mxu0 %v1095_v2 }
  0x48   : > { %1029 = vmatpush3.msra.mxu0 %v627_v48 }
  0x49   : > { %1030 = vmatprep.subr.mxu0 %v1095_v2 }
  0x4a   : > { %1031 = vmatpush3.msra.mxu0 %v626_v49 }
  0x4b   : > { %1032 = vmatprep.subr.mxu0 %v1095_v2 }
  0x4c   : > { %1033 = vmatpush3.msra.mxu0 %v625_v50 }
  0x4d   : > { %1034 = vmatprep.subr.mxu0 %v1095_v2 }
  0x4e   : > { %1035 = vmatpush3.msra.mxu0 %v624_v51 }
  0x4f   : > { %1036 = vmatprep.subr.mxu0 %v1095_v2 }
  0x50   : > { %1037 = vmatpush3.msra.mxu0 %v623_v52 }
  0x51   : > { %1038 = vmatprep.subr.mxu0 %v1095_v2 }
  0x52   : > { %1039 = vmatpush3.msra.mxu0 %v622_v53 }
  0x53   : > { %1040 = vmatprep.subr.mxu0 %v1095_v2 }
  0x54   : > { %1041 = vmatpush3.msra.mxu0 %v621_v55 }
  0x55   : > { %1043 = vmatmul.mubr.msk.f32.vlgmr.msra.gmra.mxu0 %vm618_vm4, %v1097_v38 }
  0xf5   : > { %v508_v57 = vpop.f32.mrf.mxu0 }
  0xf6   : > { %v512_v58 = vadd.f32 %v508_v57, %v417_v56 }
  0xf7   : > { %v974_v59 = vpop.f32.mrf.mxu0 }
  0xf8   : > { %514 = vst.msk [vmem:[#allocation2] sm:$0xf] %vm513_vm5, %v512_v58  ;;  %v606_v61 = vpop.f32.mrf.mxu1 }
  0xf9   : > { %v610_v62 = vadd.f32 %v606_v61, %v515_v60 }
  0xfa   : > { %v1009_v63 = vpop.f32.mrf.mxu1 }
  0xfb   : > { %611 = vst.msk [vmem:[#allocation3] sm:$0xf] %vm513_vm5, %v610_v62 }
 0x114   : > { %712 = sbr.rel (%p884_p6) target bundleno = 661 (0x295), region = 64 }
 0x115   : > { %v703_v1 = vpop.f32.mrf.mxu0 }
 0x116   : > { %v707_v3 = vadd.f32 %v703_v1, %v612_v0 }
 0x117   : > { %v1044_v4 = vpop.f32.mrf.mxu0 }
 0x118   : > { %708 = vst.msk [vmem:[#allocation4] sm:$0xf] %vm513_vm5, %v707_v3 }
 0x119   : > { %v714_v2 = vld [vmem:[#allocation2] sm:$0xf]  ;;  %v713_v6 = vld [vmem:[#allocation3] sm:$0xf]  ;;  %vm754_vm10 = vcmask 3072  }
 0x11a   : > { %v715_v8 = vsub.f32 %v713_v6, %v714_v2  ;;  %v718_v13 = vld [vmem:[%s1342_s6] sm:$0xf] }
 0x11b   : > { %v720_v14 = vld [vmem:[%s1344_s8] sm:$0xf] }
 0x11c   : > { %v721_v10 = vmul.f32 %v715_v8, %v715_v8  ;;  %v745_v15 = vsub.f32 %v720_v14, %v718_v13  ;;  %v719_v20 = vld [vmem:[%s1343_s7] sm:$0xf] }
 0x11d   : > { %v743_v21 = vsub.f32 %v719_v20, %v718_v13 }
 0x11e   : > { %v722_v12 = vsel %vm513_vm5, %v721_v10, 0.0  ;;  %v746_v16 = vand.u32 2147483647, %v745_v15 }
 0x11f   : > { %v716_v5 = vld [vmem:[#allocation4] sm:$0xf]  ;;  %v744_v23 = vand.u32 2147483647, %v743_v21 }
 0x120   : > { %v717_v7 = vsub.f32 %v716_v5, %v714_v2  ;;  %v747_v17 = vadd.f32 1e-06, %v746_v16 }
 0x122   : > { %v732_v9 = vmul.f32 %v717_v7, %v717_v7  ;;  %1066 = vrcp.f32 %v747_v17 }
 0x124   : > { %v733_v11 = vsel %vm513_vm5, %v732_v9, 0.0 }
 0x125   : > { %734 = vadd.xlane.f32.xlu0 %v733_v11 }
 0x129   : > { %723 = vadd.xlane.f32.xlu0 %v722_v12 }
 0x12f   : > { %v1067_v22 = vpop.eup %1066 }
 0x130   : > { %v749_v28 = vmul.f32 %v1067_v22, %v744_v23 }
 0x1ae   : > { %v735_v18 = vpop.xlane.xlu0 %734 }
 0x1af   : > { %1068 = vrsqrt.f32 %v735_v18  ;;  %vm738_vm6 = vcmp.eq.f32.partialorder %v735_v18, inf  ;;  %v741_v26 = vand.u32 2147483648, %v735_v18  ;;  %vm740_vm7 = vcmp.eq.f32.partialorder %v735_v18, 0.0 }
 0x1b2   : > { %v724_v19 = vpop.xlane.xlu0 %723 }
 0x1b3   : > { %1070 = vrsqrt.f32 %v724_v19  ;;  %vm727_vm8 = vcmp.eq.f32.partialorder %v724_v19, inf  ;;  %v730_v32 = vand.u32 2147483648, %v724_v19  ;;  %vm729_vm9 = vcmp.eq.f32.partialorder %v724_v19, 0.0 }
 0x1bc   : > { %v1069_v24 = vpop.eup %1068 }
 0x1bd   : > { %v737_v25 = vmul.f32 %v1069_v24, %v735_v18 }
 0x1bf   : > { %v739_v27 = vsel %vm738_vm6, %v735_v18, %v737_v25 }
 0x1c0   : > { %v1071_v29 = vpop.eup %1070  ;;  %v742_v30 = vsel %vm740_vm7, %v741_v26, %v739_v27 }
 0x1c1   : > { %v726_v31 = vmul.f32 %v1071_v29, %v724_v19  ;;  %v750_v34 = vmul.f32 %v749_v28, %v742_v30 }
 0x1c3   : > { %v728_v33 = vsel %vm727_vm8, %v724_v19, %v726_v31 }
 0x1c4   : > { %v731_v35 = vsel %vm729_vm9, %v730_v32, %v728_v33 }
 0x1c5   : > { %v751_v36 = vsub.f32 %v731_v35, %v750_v34 }
 0x1c7   : > { %v753_v37 = vmax.f32 %v751_v36, 0.0 }
 0x1c9   : > { %v755_v38 = vsel %vm754_vm10, %v753_v37, 0.0 }
 0x1ca   : > { %756 = vadd.xlane.f32.xlu1 %v755_v38 }
 0x253   : > { %v757_v39 = vpop.xlane.xlu1 %756 }
 0x254   : > { %v758_v40 = vrot.slane %v757_v39, 4 }
 0x256   : > { %v759_v41 = vadd.f32 %v758_v40, %v757_v39 }
 0x258   : > { %v760_v42 = vrot.slane %v759_v41, 2 }
 0x25a   : > { %v761_v43 = vadd.f32 %v760_v42, %v759_v41 }
 0x25c   : > { %v762_v44 = vrot.slane %v761_v43, 1 }
 0x25e   : > { %v763_v45 = vadd.f32 %v762_v44, %v761_v43 }
 0x260   : > { %1045 = vpush %v763_v45 }
 0x291   : > { %s1046_s25 = spop %1045 }
 0x292   : > { %s765_s26 = smul.f32 0.25, %s1046_s25 }
 0x294   : > { %767 = sst [smem:[#allocation5]] %s765_s26 }
 0x295 PF: > { %p1051_p7 = scmp.eq.s32.totalorder %s1155_s10, 2  ;;  %s1098_s27 = smov [#allocation5]  }
 0x297   : > { %1048 = dma.smem_to_hbm (%p1051_p7), %s1098_s27, 16, %s1345_s9, [#allocation6]  }
 0x298   : > { %1087 = dma.done.wait (%p1051_p7), [#allocation6], 16  }
 0x299   : > { %1089 = vsyncadd (%p1051_p7), [#allocation6], 4294967280 }
 0x29a   : > { %781 = sfence }
 0x29b PF: > { %s20_s30 = sadd.s32 1, %s1092_s30  }
 0x29c   : > { %p17_p8 = scmp.ge.s32.totalorder %s20_s30, 5  }
 0x29e   :  { %19 = sbr.rel (!%p17_p8) target bundleno = 1 (0x1), region = 107 }
 0x2a3   :  { %787 = vsyncpa [#allocation6], 1 }
 0x2a4   :  { %789 = vsyncpa [#allocation6 + $0x1], 1 }

</bundles_post_ra>
